<compile_context>
chip_gen: v7x
topology: tpu7x:2x2x1
jax: 0.10.0
libtpu: 0.0.40
codegen_flags: <defaults>
</compile_context>

<pallas_src>
import functools

import jax
import jax.numpy as jnp
from jax.experimental import pallas as pl
from jax.experimental.pallas import tpu as pltpu


_LANE = 128
_SUBLANE = 8
# Budget for the double-buffered pipeline buffers; leaves headroom inside v7x's
# 64 MiB physical VMEM and is comfortably below v5e/v6e's 128 MiB.
_VMEM_BUDGET = 40 * 1024 * 1024


def _affine_kernel(x_ref, w_ref, b_ref, y_ref):
    # y tile = x tile @ w + b  (f32 accumulation on the MXU, bias broadcast (1, N)).
    acc = jnp.dot(x_ref[...], w_ref[...], preferred_element_type=jnp.float32)
    y_ref[...] = (acc + b_ref[...].astype(jnp.float32)).astype(y_ref.dtype)


def _round_down(v, m):
    return (v // m) * m


def _round_up(v, m):
    return ((v + m - 1) // m) * m


def _tiled_affine(x2, w, b, *, tile_rows):
    """out = x2 @ w + b, row-tiled with a pipelined 1-D 'parallel' grid."""
    rows, k = x2.shape
    n = w.shape[1]

    def footprint(tr):  # lane/sublane-padded, double-buffered VMEM bytes
        xb = _round_up(tr, _SUBLANE) * _round_up(k, _LANE) * x2.dtype.itemsize
        ob = _round_up(tr, _SUBLANE) * _round_up(n, _LANE) * 4
        wb = _round_up(k, _SUBLANE) * _round_up(n, _LANE) * w.dtype.itemsize
        bb = _SUBLANE * _round_up(n, _LANE) * b.dtype.itemsize
        return 2 * (xb + ob + wb + bb)

    tr = max(1, min(tile_rows, rows))
    # Keep >= 4 grid steps when tiling is active (v7x megacore + pipeline overlap).
    if rows > tr and pl.cdiv(rows, tr) < 4:
        tr = pl.cdiv(rows, 4)
    # Blocks smaller than the full dim must be sublane (8) multiples.
    if tr < rows:
        tr = max(_SUBLANE, _round_down(tr, _SUBLANE))
    # Shrink until the double-buffered pipeline fits the VMEM budget.
    while footprint(tr) > _VMEM_BUDGET and tr > _SUBLANE:
        tr = max(_SUBLANE, _round_down(pl.cdiv(tr, 2), _SUBLANE))

    grid = (pl.cdiv(rows, tr),)
    cost = pl.CostEstimate(
        flops=2 * rows * k * n,
        transcendentals=0,
        bytes_accessed=(x2.size * x2.dtype.itemsize + w.size * w.dtype.itemsize
                        + b.size * b.dtype.itemsize + rows * n * 4),
    )

    # TODO(synk): pipeline_mode=pl.Buffered(1) on the grid-invariant w/b specs and
    # pl.Buffered(3) on x are second-order wins (sub-MiB VMEM / residual DMA latency);
    # left out to keep the lowering path maximally portable across jax versions.
    return pl.pallas_call(
        _affine_kernel,
        out_shape=jax.ShapeDtypeStruct((rows, n), jnp.float32),
        grid_spec=pltpu.PrefetchScalarGridSpec(
            num_scalar_prefetch=0,
            grid=grid,
            in_specs=[
                pl.BlockSpec((tr, k), lambda i: (i, 0)),   # x: tiled over rows
                pl.BlockSpec((k, n), lambda i: (0, 0)),    # weights: resident
                pl.BlockSpec((1, n), lambda i: (0, 0)),    # bias: resident
            ],
            out_specs=pl.BlockSpec((tr, n), lambda i: (i, 0)),
        ),
        compiler_params=pltpu.CompilerParams(
            dimension_semantics=("parallel",),
            vmem_limit_bytes=int(max(footprint(tr) + (4 << 20), 16 << 20)),
        ),
        cost_estimate=cost,
    )(x2, w, b)


@functools.partial(jax.jit, static_argnames=("tile_batch",))
def l1_p_forward(inputs, delta_coef_matrix, delta_0_matrix, *, tile_batch=16384):
    """JAX/Pallas equivalent of l1_p.forward -> (predicted_y, delta_l1_penalty)."""
    x = inputs
    if x.ndim != 2:                              # torch.squeeze(inputs, dim=1)
        x = jnp.squeeze(x, axis=1)
    # Keep bf16 activations in bf16 (halves the dominant HBM read); anything else f32.
    if x.dtype != jnp.bfloat16 and x.dtype != jnp.float32:
        x = x.astype(jnp.float32)

    size_in, q = delta_coef_matrix.shape
    batch = x.shape[0]

    # ---- tiny parameter glue + L1 penalty (parameter-only, stays in plain JAX) ----
    delta_mat = jnp.concatenate(
        [delta_0_matrix.astype(jnp.float32), delta_coef_matrix.astype(jnp.float32)],
        axis=0)                                   # (size_in + 1, Q)
    beta_mat = jnp.cumsum(delta_mat, axis=1)      # == t(cumsum(t(delta_mat), 0))
    beta_coef = beta_mat[1:, :]                   # (size_in, Q)
    beta_0 = beta_mat[0:1, :]                     # (1, Q), f32

    delta_vec = delta_mat[1:, 1:]
    delta_0_vec = delta_mat[0:1, 1:]
    delta_minus_sum = jnp.sum(jnp.maximum(0.0, -delta_vec), axis=0)
    delta_0_clipped = jnp.maximum(delta_0_vec, delta_minus_sum[None, :])
    # NOTE: for Q == 1 this is a mean over an empty slice -> NaN, matching torch.
    penalty = jnp.mean(jnp.abs(delta_0_vec - delta_0_clipped))

    # ---- batch-tiled affine Pallas kernel ----
    w = beta_coef.astype(x.dtype) if x.dtype == jnp.bfloat16 else beta_coef

    group = _LANE // q if (q < _LANE and _LANE % q == 0) else 1
    use_dense = (group > 1 and batch % group == 0 and group * size_in <= 2048)

    if use_dense:
        # Lane-dense formulation: fold `group = 128 // Q` consecutive batch rows into
        # the lane axis so both the x block (group*size_in lanes) and the output block
        # (group*Q == 128 lanes) are dense -> no masked stores, no lane padding.
        #   out[r, g*Q + j] = sum_k x[r*group + g, k] * beta_coef[k, j] + beta_0[j]
        # i.e. x.reshape(B/g, g*K) @ kron(I_g, beta_coef)   (block-diagonal weight).
        # Wrapper-side reshapes are free (row-major).  (Non-finite x values would
        # leak across rows in a group via 0*inf; acceptable for this layer.)
        x_d = x.reshape(batch // group, group * size_in)
        w_d = jnp.kron(jnp.eye(group, dtype=w.dtype), w)     # (g*size_in, g*Q)
        b_d = jnp.tile(beta_0, (1, group))                   # (1, g*Q) == (1, 128)
        tile_rows = max(1, tile_batch // group)
        y = _tiled_affine(x_d, w_d, b_d, tile_rows=tile_rows)
        y = y.reshape(batch, q)
    else:
        # Fallback: Q does not divide 128, or batch is not a multiple of 128 // Q.
        y = _tiled_affine(x, w, beta_0, tile_rows=tile_batch)

    return y, penalty


def _reference(x, delta_coef, delta_0):
    """Plain-JAX reference mirroring the PyTorch forward."""
    x = x.astype(jnp.float32)
    delta_mat = jnp.concatenate([delta_0, delta_coef], axis=0)
    beta_mat = jnp.cumsum(delta_mat, axis=1)
    y_ref = x @ beta_mat[1:, :] + beta_mat[0, :]
    delta_vec = delta_mat[1:, 1:]
    delta_0_vec = delta_mat[0:1, 1:]
    dms = jnp.sum(jnp.maximum(0.0, -delta_vec), axis=0)
    d0c = jnp.maximum(delta_0_vec, dms[None, :])
    pen_ref = jnp.mean(jnp.abs(delta_0_vec - d0c))
    return y_ref, pen_ref


if __name__ == "__main__":
    key = jax.random.PRNGKey(0)
    SIZE_IN, Q = 32, 8
    k1, k2, k3, k4, k5, k6 = jax.random.split(key, 6)

    # nn.init.constant_(..., 0) would make the forward trivially zero; use small
    # deterministic random parameters of the same shapes to exercise the compute path.
    delta_coef = 0.1 * jax.random.normal(k1, (SIZE_IN, Q), dtype=jnp.float32)
    delta_0 = 0.1 * jax.random.normal(k2, (1, Q), dtype=jnp.float32)

    # 1) small batch, fallback layout (batch not a multiple of 128//Q), single-step grid
    x1 = jax.random.normal(k3, (8, SIZE_IN), dtype=jnp.float32)
    y1, p1 = l1_p_forward(x1, delta_coef, delta_0)
    jax.block_until_ready((y1, p1))
    y1_ref, p1_ref = _reference(x1, delta_coef, delta_0)
    assert y1.shape == (8, Q) and y1.dtype == jnp.float32
    assert jnp.allclose(y1, y1_ref, atol=1e-5, rtol=1e-5)
    assert jnp.allclose(p1, p1_ref, atol=1e-6, rtol=1e-5)

    # 2) fallback layout, multi-step grid with non-multiple-of-8 tile request + ragged tail
    x2 = jax.random.normal(k4, (300, SIZE_IN), dtype=jnp.float32)
    y2, p2 = l1_p_forward(x2, delta_coef, delta_0, tile_batch=100)
    jax.block_until_ready((y2, p2))
    y2_ref, _ = _reference(x2, delta_coef, delta_0)
    assert y2.shape == (300, Q)
    assert jnp.allclose(y2, y2_ref, atol=1e-5, rtol=1e-5)
    assert jnp.allclose(p2, p1_ref, atol=1e-6, rtol=1e-5)

    # 3) lane-dense layout (batch % 16 == 0), multi-step grid with a ragged tail block
    x3 = jax.random.normal(k5, (1152, SIZE_IN), dtype=jnp.float32)
    y3, p3 = l1_p_forward(x3, delta_coef, delta_0, tile_batch=256)
    jax.block_until_ready((y3, p3))
    y3_ref, _ = _reference(x3, delta_coef, delta_0)
    assert y3.shape == (1152, Q)
    assert jnp.allclose(y3, y3_ref, atol=1e-4, rtol=1e-4)

    # 4) bf16 activations passed straight through (lane-dense path, f32 accumulation)
    x4 = jax.random.normal(k6, (1024, SIZE_IN), dtype=jnp.float32).astype(jnp.bfloat16)
    y4, p4 = l1_p_forward(x4, delta_coef, delta_0)
    jax.block_until_ready((y4, p4))
    y4_ref, _ = _reference(x4, delta_coef, delta_0)
    assert y4.dtype == jnp.float32
    assert jnp.allclose(y4, y4_ref, atol=5e-2, rtol=5e-2)

    print("KERNEL_OK")
</pallas_src>

<mosaic_0001>
module attributes {stable_mosaic.version = 11 : i64} {
  func.func @_affine_kernel(%arg0: i32, %arg1: memref<8x32xf32, #tpu.memory_space<vmem>>, %arg2: memref<32x8xf32, #tpu.memory_space<vmem>>, %arg3: memref<1x8xf32, #tpu.memory_space<vmem>>, %arg4: memref<8x8xf32, #tpu.memory_space<vmem>>) attributes {dimension_semantics = [#tpu.dimension_semantics<parallel>], iteration_bounds = array<i64: 1>, scalar_prefetch = 0 : i64, scratch_operands = 0 : i64, tpu.core_type = #tpu.core_type<tc>, window_params = [{transform_indices = @transform_0, window_bounds = array<i64: 8, 32>}, {pipeline_mode = #tpu.pipeline_mode<synchronous>, transform_indices = @transform_1, window_bounds = array<i64: 32, 8>}, {pipeline_mode = #tpu.pipeline_mode<synchronous>, transform_indices = @transform_2, window_bounds = array<i64: 1, 8>}, {transform_indices = @transform_3, window_bounds = array<i64: 8, 8>}]} {
    %c0 = arith.constant 0 : index
    %c0_0 = arith.constant 0 : index
    %0 = vector.load %arg1[%c0, %c0_0] : memref<8x32xf32, #tpu.memory_space<vmem>>, vector<8x32xf32>
    %c0_1 = arith.constant 0 : index
    %c0_2 = arith.constant 0 : index
    %1 = vector.load %arg2[%c0_1, %c0_2] : memref<32x8xf32, #tpu.memory_space<vmem>>, vector<32x8xf32>
    %cst = arith.constant dense<0.000000e+00> : vector<8x8xf32>
    %2 = tpu.matmul %0, %1, %cst {dimension_numbers = #tpu.dot_dimension_numbers<[1], [0], [0], [1], [0, 0, 1, 1], [], []>} : vector<8x32xf32>, vector<32x8xf32>, vector<8x8xf32> -> vector<8x8xf32>
    %c0_3 = arith.constant 0 : index
    %c0_4 = arith.constant 0 : index
    %3 = vector.load %arg3[%c0_3, %c0_4] : memref<1x8xf32, #tpu.memory_space<vmem>>, vector<1x8xf32>
    %4 = vector.broadcast %3 : vector<1x8xf32> to vector<8x8xf32>
    %5 = arith.addf %2, %4 : vector<8x8xf32>
    %c0_5 = arith.constant 0 : index
    %c0_6 = arith.constant 0 : index
    %6 = vector.load %arg4[%c0_5, %c0_6] : memref<8x8xf32, #tpu.memory_space<vmem>>, vector<8x8xf32>
    tpu.vector_store %arg4[%c0_5, %c0_6], %5 {strides = array<i32>} : memref<8x8xf32, #tpu.memory_space<vmem>>, vector<8x8xf32>,
    return
  }
  func.func @transform_0(%arg0: i32) -> (i32, i32) {
    %c0_i32 = arith.constant 0 : i32
    %c0_i32_0 = arith.constant 0 : i32
    return %arg0, %c0_i32 : i32, i32
  }
  func.func @transform_1(%arg0: i32) -> (i32, i32) {
    %c0_i32 = arith.constant 0 : i32
    %c0_i32_0 = arith.constant 0 : i32
    %c0_i32_1 = arith.constant 0 : i32
    return %c0_i32, %c0_i32_0 : i32, i32
  }
  func.func @transform_2(%arg0: i32) -> (i32, i32) {
    %c0_i32 = arith.constant 0 : i32
    %c0_i32_0 = arith.constant 0 : i32
    %c0_i32_1 = arith.constant 0 : i32
    return %c0_i32, %c0_i32_0 : i32, i32
  }
  func.func @transform_3(%arg0: i32) -> (i32, i32) {
    %c0_i32 = arith.constant 0 : i32
    %c0_i32_0 = arith.constant 0 : i32
    return %arg0, %c0_i32 : i32, i32
  }
}

</mosaic_0001>

<bundles_post_ra>
// kernel: l1_p_forward.1
= control target key start
LH: loop header
LB: loop body
LE: loop exit
PB: predicated region body
PF: predicated region fallthrough
CT: control target
= control target key end

     0   :  { %v169_v3 = vmov 0.0|0.0   ;;  %vm170_vm0 = vmmov 0   ;;  %v171_v6 = vmov 0.0   ;;  %s223_s0 = inlined_call_operand.vmem [shape: f32[8,32], index: 0, kind: input, shape index: {}]   ;;  %s224_s1 = inlined_call_operand.vmem [shape: f32[32,8], index: 1, kind: input, shape index: {}]   ;;  %s225_s2 = inlined_call_operand.vmem [shape: f32[1,8], index: 2, kind: input, shape index: {}]   ;;  %s226_s3 = inlined_call_operand.hbm [shape: f32[8,8], index: 3, kind: output, shape index: {}]  }
   0x1   :  { %v16_v0 = vld [vmem:[%s224_s1] sm:$0xff]  ;;  %v17_v1 = vld [vmem:[%s224_s1 + $0x8] sm:$0xff]  ;;  %v18_v2 = vld [vmem:[%s224_s1 + $0x10] sm:$0xff]  ;;  %135 = vmatprep.subr.bf16.mxu0 %v169_v3  ;;  %132 = vmatprep.mubr.msk.f32.mxu0 %vm170_vm0, %v171_v6 }
   0x2   :  { %v136_v4 = vpack.c.bf16 %v17_v1, %v16_v0  ;;  %v19_v5 = vld [vmem:[%s224_s1 + $0x18] sm:$0xff] }
   0x3   :  { %8 = vsyncpa [#allocation3], 0  ;;  %v139_v7 = vpack.c.bf16 %v19_v5, %v18_v2  ;;  %v15_v8 = vld [vmem:[%s223_s0] sm:$0xff]  ;;  %vm27_vm1 = vcmask 261120   ;;  %s172_s24 = smov [#allocation2]   ;;  %vm101_vm2 = vcmask 64512  }
   0x4   :  { %137 = vmatpush3.bf16.msra.mxu0 %v136_v4  ;;  %v117_v9 = vld [vmem:[%s225_s2] ss:$0 sm:$0xff]  ;;  %s109_s1 = sshll.u32 %s172_s24, 4  ;;  %s110_s1 = int_to_ptr.vmem [resolvable:$true] %s109_s1 }
   0x5   :  { %138 = vmatprep.subr.bf16.mxu0 %v169_v3  ;;  %s145_s25 = scalar_lea.vmem %s110_s1, 128  ;;  %p150_p1 = scmp.lt.s32.totalorder %s110_s1, %s110_s1 }
   0x6   :  { %p146_p0 = scmp.ne.s32.totalorder %s110_s1, %s145_s25  ;;  %p151_p2 = scmp.lt.s32.totalorder %s145_s25, %s145_s25 }
   0x8   :  { %140 = vmatpush3.bf16.msra.mxu0 %v139_v7  ;;  %p152_p3 = por %p151_p2, %p150_p1 }
   0xa   :  { %p153_p4 = pnand %p152_p3, %p146_p0 }
   0xb   :  { %133 = vmatmul.mubr.msk.f32.vlgmr.msra.gmra.mrb[0].mxu0 %vm27_vm1, %v15_v8 }
  0xde   :  { %v97_v10 = vpop.f32.mrb[0].mxu0 }
  0xdf   :  { %v98_v11 = vadd.f32 %v117_v9, %v97_v10  ;;  %v134_v12 = vpop.f32.mrb[1].mxu0 }
  0xe1   :  { %102 = vst.msk [vmem:[#allocation2] sm:$0xff] %vm101_vm2, %v98_v11 }
  0xe2   :  { %156 = shalt.err (!%p153_p4)
}
  0xe3   :  { %s157_s27 = scalar_lea.hbm %s226_s3, 128 }
  0xe4   :  { %p158_p5 = scmp.ne.s32.totalorder %s226_s3, %s157_s27  ;;  %p161_p6 = scmp.lt.u32.totalorder %s157_s27, %s226_s3 }
  0xe6   :  { %p163_p7 = pnand %p161_p6, %p158_p5 }
  0xe8   :  { %166 = shalt.err (!%p163_p7)
}
  0xe9   :  { %112 = dma.vmem_to_hbm [thread:$0]  %s110_s1, 128, %s226_s3, [#allocation3]  }
  0xea   :  { %167 = dma.done.wait [#allocation3], 128  }
  0xeb   :  { %168 = vsyncadd [#allocation3], 4294967168 }
  0xec   :  { %116 = vsyncpa [#allocation3], 1 }

</bundles_post_ra>
